<compile_context>
chip_gen: v6e
topology: v6e:2x2x1
jax: 0.10.0
libtpu: 0.0.40
codegen_flags: <defaults>
</compile_context>

<pallas_src>
import jax
import jax.numpy as jnp
from jax.experimental import pallas as pl
from jax.experimental.pallas import tpu as pltpu

FEAT_SIZE = 32    # feat_model.final_feat_dim -> emb_size = 2 * FEAT_SIZE
HIDDEN = 128      # hidden width of the synthetic feat_model MLP (lane-filling)


def copy_speaker_kernel(feats_ref, targets_ref, inv_ref, mask_ref,
                        w1_ref, b1_ref, w2_ref, b2_ref, out_ref):
    # feats_ref  : [m_tile, d_in]    compute dtype (batch tile, objects folded into M)
    # targets_ref: [1, 1, m_tile]    compute dtype (flattened 0/1 targets)
    # inv_ref    : [TB, 2]           f32   (precomputed 1/n_pos, 1/n_neg)
    # mask_ref   : [TB, m_tile]      compute dtype, grid-invariant block-diag mask
    # w1 [d_in,H], b1 [1,H] f32, w2 [H,F], b2 [1,F] f32 (VMEM-resident, invariant)
    # out_ref    : [TB, out_cols]    f32, out_cols is a multiple of 128
    tb = out_ref.shape[0]
    feat_size = w2_ref.shape[1]
    out_cols = out_ref.shape[1]

    # feat_model: Linear -> ReLU -> Linear; M = TB * n_obj rows per MXU call.
    x = feats_ref[...]
    h = jnp.dot(x, w1_ref[...], preferred_element_type=jnp.float32) + b1_ref[...]
    h = jnp.maximum(h, 0.0)
    emb = jnp.dot(h.astype(w2_ref.dtype), w2_ref[...],
                  preferred_element_type=jnp.float32) + b2_ref[...]
    emb_c = emb.astype(mask_ref.dtype)                 # [m_tile, F]

    # Target-weighted pooling as matmuls with a precomputed block-diag mask.
    mask = mask_ref[...]                               # [TB, m_tile]
    t = targets_ref[0]                                 # [1, m_tile]
    sel_pos = mask * t                                 # [TB, m_tile]
    pos_sum = jnp.dot(sel_pos, emb_c, preferred_element_type=jnp.float32)  # [TB, F]
    tot_sum = jnp.dot(mask, emb_c, preferred_element_type=jnp.float32)     # [TB, F]
    neg_sum = tot_sum - pos_sum

    inv = inv_ref[...]                                 # [TB, 2] f32
    pos = pos_sum * inv[:, 0:1]
    neg = neg_sum * inv[:, 1:2]

    # Single lane-dense (128-multiple) store of [pos | neg | zero-pad].
    pad = out_cols - 2 * feat_size
    pieces = [pos, neg]
    if pad > 0:
        pieces.append(jnp.zeros((tb, pad), jnp.float32))
    out_ref[...] = jnp.concatenate(pieces, axis=1).astype(out_ref.dtype)


def _choose_batch_tile(B, n_obj, d_in, itemsize,
                       feats_buf_budget=8 << 20, tb_cap=256):
    """Pick (batch_tile, b_pad, num_tiles).

    Sized from a per-buffer VMEM budget for the double-buffered feats block
    (the dominant DMA); capped at 256 rows.  Prefers tiles that divide B so
    the feats tensor never needs a padding copy, and keeps >=2 grid steps
    when possible so a 2-TensorCore chip (v7x) can shard the parallel axis.
    """
    tb_max = (feats_buf_budget // (n_obj * d_in * itemsize)) // 8 * 8
    tb_max = max(8, min(tb_cap, tb_max))
    if B <= tb_max:
        if B >= 16 and B % 16 == 0:
            return B // 2, B, 2          # two tiles -> both TCs on v7x
        return B, B, 1                   # single full-array tile, no padding
    for tb in range(tb_max, 7, -8):
        if B % tb == 0:
            return tb, B, B // tb        # exact divisor, no padding
    # TODO(synk): handle the ragged tail with a second small call instead of a
    #             padding copy of feats.
    b_pad = pl.cdiv(B, tb_max) * tb_max
    return tb_max, b_pad, b_pad // tb_max


def copy_speaker_forward(feats, targets, params, *, batch_tile=None,
                         compute_dtype=jnp.bfloat16):
    """feats: [B, n_obj, C, H, W] (ideally already produced in compute_dtype);
    targets: [B, n_obj] float 0/1.  Returns [B, 2*feat_size] float32.

    compute_dtype=jnp.float32 is the opt-in bit-near-parity path vs the
    PyTorch reference; bf16 (default) halves the dominant HBM traffic.
    """
    w1, b1, w2, b2 = params
    B, n_obj = feats.shape[0], feats.shape[1]
    hidden = w1.shape[1]
    feat_size = w2.shape[1]

    feats_2d = feats.reshape(B * n_obj, -1)        # row-major flatten (view-like)
    d_in = feats_2d.shape[1]
    if feats_2d.dtype != compute_dtype:
        # NOTE: this cast is an extra HBM pass over the largest tensor; prefer
        # producing feats in compute_dtype upstream so it is a no-op.
        feats_2d = feats_2d.astype(compute_dtype)

    cds = jnp.dtype(compute_dtype)
    if batch_tile is None:
        batch_tile, b_pad, num_tiles = _choose_batch_tile(B, n_obj, d_in, cds.itemsize)
    else:
        b_pad = pl.cdiv(B, batch_tile) * batch_tile
        num_tiles = b_pad // batch_tile
    if num_tiles > 1:
        assert batch_tile % 8 == 0, "multi-tile grids need 8-row-aligned tiles"
    m_tile = batch_tile * n_obj

    targets_f = targets.astype(jnp.float32)
    if b_pad != B:
        feats_2d = jnp.pad(feats_2d, ((0, (b_pad - B) * n_obj), (0, 0)))
        targets_f = jnp.pad(targets_f, ((0, b_pad - B), (0, 0)))

    # Precomputed per-example reciprocal counts (removes the in-kernel
    # cross-lane count reduce + reciprocal).  clamp(min=1) as in the reference.
    tsum = targets_f.sum(axis=1)
    inv = jnp.stack([1.0 / jnp.maximum(tsum, 1.0),
                     1.0 / jnp.maximum(n_obj - tsum, 1.0)], axis=1)   # [b_pad, 2] f32

    targets_c = targets_f.astype(compute_dtype).reshape(num_tiles, 1, m_tile)

    # Static block-diagonal selection mask, built once, VMEM-resident.
    col = jnp.arange(m_tile, dtype=jnp.int32)[None, :]
    row = jnp.arange(batch_tile, dtype=jnp.int32)[:, None]
    blockmask = (col // n_obj == row).astype(compute_dtype)          # [TB, m_tile]

    w1c, w2c = w1.astype(compute_dtype), w2.astype(compute_dtype)
    b1f, b2f = b1.astype(jnp.float32), b2.astype(jnp.float32)

    out_cols = pl.cdiv(2 * feat_size, 128) * 128    # lane-dense (unmasked) stores

    grid_spec = pltpu.PrefetchScalarGridSpec(
        num_scalar_prefetch=0,
        grid=(num_tiles,),
        in_specs=[
            pl.BlockSpec((m_tile, d_in), lambda g: (g, 0)),
            pl.BlockSpec((1, 1, m_tile), lambda g: (g, 0, 0)),
            pl.BlockSpec((batch_tile, 2), lambda g: (g, 0)),
            # Grid-invariant inputs: whole array resident in VMEM, no per-step
            # re-fetch / double-buffering.
            pl.BlockSpec(memory_space=pltpu.MemorySpace.VMEM),   # blockmask
            pl.BlockSpec(memory_space=pltpu.MemorySpace.VMEM),   # w1
            pl.BlockSpec(memory_space=pltpu.MemorySpace.VMEM),   # b1
            pl.BlockSpec(memory_space=pltpu.MemorySpace.VMEM),   # w2
            pl.BlockSpec(memory_space=pltpu.MemorySpace.VMEM),   # b2
        ],
        out_specs=pl.BlockSpec((batch_tile, out_cols), lambda g: (g, 0)),
    )

    # VMEM sizing: double-buffered blocks + resident weights/mask + intermediates.
    feats_blk = m_tile * d_in * cds.itemsize
    small_blk = m_tile * cds.itemsize + batch_tile * 128 * 4 + batch_tile * out_cols * 4
    resident = (batch_tile * m_tile * cds.itemsize
                + (d_in * hidden + hidden * feat_size) * cds.itemsize
                + 8 * (hidden + feat_size) * 4)
    interm = (m_tile * hidden * 4 + 2 * m_tile * max(feat_size, 128) * 4
              + batch_tile * m_tile * cds.itemsize
              + 4 * batch_tile * max(feat_size, 128) * 4)
    vmem_needed = 2 * (feats_blk + small_blk) + resident + interm
    vmem_limit = int(min(56 << 20, max(int(vmem_needed * 1.25) + (4 << 20), 32 << 20)))

    mlp_flops = 2 * b_pad * n_obj * (d_in * hidden + hidden * feat_size)
    pool_flops = 4 * b_pad * m_tile * feat_size + 4 * b_pad * feat_size
    bytes_accessed = (feats_2d.size * cds.itemsize
                      + targets_c.size * cds.itemsize + inv.size * 4
                      + blockmask.size * cds.itemsize
                      + (w1c.size + w2c.size) * cds.itemsize
                      + (b1f.size + b2f.size) * 4
                      + b_pad * out_cols * 4)
    cost = pl.CostEstimate(flops=mlp_flops + pool_flops, transcendentals=0,
                           bytes_accessed=bytes_accessed)

    out = pl.pallas_call(
        copy_speaker_kernel,
        out_shape=jax.ShapeDtypeStruct((b_pad, out_cols), jnp.float32),
        grid_spec=grid_spec,
        compiler_params=pltpu.CompilerParams(
            dimension_semantics=("parallel",),
            vmem_limit_bytes=vmem_limit),
        cost_estimate=cost,
    )(feats_2d, targets_c, inv, blockmask, w1c, b1f, w2c, b2f)
    # Padded batch rows / padded lanes hold garbage by design; slice them off.
    return out[:B, :2 * feat_size]


def copy_speaker_reference(feats, targets, params):
    """Pure-JAX f32 reference mirroring the PyTorch semantics (eval mode)."""
    w1, b1, w2, b2 = params
    B, n_obj = feats.shape[0], feats.shape[1]
    x = feats.reshape(B * n_obj, -1).astype(jnp.float32)
    h = jnp.maximum(x @ w1 + b1, 0.0)
    emb = (h @ w2 + b2).reshape(B, n_obj, -1)
    t = targets[..., None].astype(jnp.float32)
    rev_t = 1.0 - t
    pos = (emb * t).sum(1) / jnp.maximum(targets.sum(1, keepdims=True), 1.0)
    neg = (emb * rev_t).sum(1) / jnp.maximum((1.0 - targets).sum(1, keepdims=True), 1.0)
    return jnp.concatenate([pos, neg], axis=1)


def init_params(key, d_in):
    k1, k2, k3, k4 = jax.random.split(key, 4)
    w1 = 0.02 * jax.random.normal(k1, (d_in, HIDDEN), jnp.float32)
    b1 = 0.02 * jax.random.normal(k2, (1, HIDDEN), jnp.float32)
    w2 = 0.02 * jax.random.normal(k3, (HIDDEN, FEAT_SIZE), jnp.float32)
    b2 = 0.02 * jax.random.normal(k4, (1, FEAT_SIZE), jnp.float32)
    return (w1, b1, w2, b2)


if __name__ == "__main__":
    key = jax.random.PRNGKey(0)
    kf, kt, kp = jax.random.split(key, 3)

    B, N_OBJ, C, H, W = 2, 8, 4, 16, 16          # feats: [B, n_obj, C, H, W]
    feats_f32 = jax.random.normal(kf, (B, N_OBJ, C, H, W), jnp.float32)
    targets = (jax.random.uniform(kt, (B, N_OBJ)) < 0.5).astype(jnp.float32)
    params = init_params(kp, C * H * W)

    # Default (bf16) path: the producer emits bf16 feats so the wrapper does
    # not re-cast the big tensor.
    feats_bf16 = feats_f32.astype(jnp.bfloat16)
    out = jax.block_until_ready(copy_speaker_forward(feats_bf16, targets, params))
    ref = copy_speaker_reference(feats_bf16, targets, params)
    assert out.shape == (B, 2 * FEAT_SIZE)
    assert jnp.allclose(out, ref, atol=2e-2, rtol=2e-2), "bf16 mismatch vs reference"

    # Opt-in f32 path: near bit-parity with the PyTorch reference.
    out_f32 = jax.block_until_ready(
        copy_speaker_forward(feats_f32, targets, params, compute_dtype=jnp.float32))
    ref_f32 = copy_speaker_reference(feats_f32, targets, params)
    assert out_f32.shape == (B, 2 * FEAT_SIZE)
    assert jnp.allclose(out_f32, ref_f32, atol=1e-4, rtol=1e-4), "f32 mismatch vs reference"

    print("KERNEL_OK")
</pallas_src>

<mosaic_0001>
module attributes {stable_mosaic.version = 11 : i64} {
  func.func @copy_speaker_kernel(%arg0: i32, %arg1: memref<16x1024xbf16, #tpu.memory_space<vmem>>, %arg2: memref<1x1x16xbf16, #tpu.memory_space<vmem>>, %arg3: memref<2x2xf32, #tpu.memory_space<vmem>>, %arg4: memref<2x16xbf16, #tpu.memory_space<vmem>>, %arg5: memref<1024x128xbf16, #tpu.memory_space<vmem>>, %arg6: memref<1x128xf32, #tpu.memory_space<vmem>>, %arg7: memref<128x32xbf16, #tpu.memory_space<vmem>>, %arg8: memref<1x32xf32, #tpu.memory_space<vmem>>, %arg9: memref<2x128xf32, #tpu.memory_space<vmem>>) attributes {dimension_semantics = [#tpu.dimension_semantics<parallel>], iteration_bounds = array<i64: 1>, scalar_prefetch = 0 : i64, scratch_operands = 0 : i64, tpu.core_type = #tpu.core_type<tc>, window_params = [{transform_indices = @transform_0, window_bounds = array<i64: 16, 1024>}, {transform_indices = @transform_1, window_bounds = array<i64: 1, 1, 16>}, {transform_indices = @transform_2, window_bounds = array<i64: 2, 2>}, {pipeline_mode = #tpu.pipeline_mode<synchronous>, transform_indices = @transform_3, window_bounds = array<i64: 2, 16>}, {pipeline_mode = #tpu.pipeline_mode<synchronous>, transform_indices = @transform_4, window_bounds = array<i64: 1024, 128>}, {pipeline_mode = #tpu.pipeline_mode<synchronous>, transform_indices = @transform_5, window_bounds = array<i64: 1, 128>}, {pipeline_mode = #tpu.pipeline_mode<synchronous>, transform_indices = @transform_6, window_bounds = array<i64: 128, 32>}, {pipeline_mode = #tpu.pipeline_mode<synchronous>, transform_indices = @transform_7, window_bounds = array<i64: 1, 32>}, {transform_indices = @transform_8, window_bounds = array<i64: 2, 128>}]} {
    %c0 = arith.constant 0 : index
    %c0_0 = arith.constant 0 : index
    %0 = vector.load %arg1[%c0, %c0_0] : memref<16x1024xbf16, #tpu.memory_space<vmem>>, vector<16x1024xbf16>
    %c0_1 = arith.constant 0 : index
    %c0_2 = arith.constant 0 : index
    %1 = vector.load %arg5[%c0_1, %c0_2] : memref<1024x128xbf16, #tpu.memory_space<vmem>>, vector<1024x128xbf16>
    %cst = arith.constant dense<0.000000e+00> : vector<16x128xf32>
    %2 = tpu.matmul %0, %1, %cst {dimension_numbers = #tpu.dot_dimension_numbers<[1], [0], [0], [1], [0, 0, 1, 1], [], []>} : vector<16x1024xbf16>, vector<1024x128xbf16>, vector<16x128xf32> -> vector<16x128xf32>
    %c0_3 = arith.constant 0 : index
    %c0_4 = arith.constant 0 : index
    %3 = vector.load %arg6[%c0_3, %c0_4] : memref<1x128xf32, #tpu.memory_space<vmem>>, vector<1x128xf32>
    %4 = vector.broadcast %3 : vector<1x128xf32> to vector<16x128xf32>
    %5 = arith.addf %2, %4 : vector<16x128xf32>
    %cst_5 = arith.constant 0.000000e+00 : f32
    %6 = vector.broadcast %cst_5 : f32 to vector<16x128xf32>
    %7 = arith.maximumf %5, %6 : vector<16x128xf32>
    %8 = arith.truncf %7 : vector<16x128xf32> to vector<16x128xbf16>
    %c0_6 = arith.constant 0 : index
    %c0_7 = arith.constant 0 : index
    %9 = vector.load %arg7[%c0_6, %c0_7] : memref<128x32xbf16, #tpu.memory_space<vmem>>, vector<128x32xbf16>
    %cst_8 = arith.constant dense<0.000000e+00> : vector<16x32xf32>
    %10 = tpu.matmul %8, %9, %cst_8 {dimension_numbers = #tpu.dot_dimension_numbers<[1], [0], [0], [1], [0, 0, 1, 1], [], []>} : vector<16x128xbf16>, vector<128x32xbf16>, vector<16x32xf32> -> vector<16x32xf32>
    %c0_9 = arith.constant 0 : index
    %c0_10 = arith.constant 0 : index
    %11 = vector.load %arg8[%c0_9, %c0_10] : memref<1x32xf32, #tpu.memory_space<vmem>>, vector<1x32xf32>
    %12 = vector.broadcast %11 : vector<1x32xf32> to vector<16x32xf32>
    %13 = arith.addf %10, %12 : vector<16x32xf32>
    %14 = arith.truncf %13 : vector<16x32xf32> to vector<16x32xbf16>
    %c0_11 = arith.constant 0 : index
    %c0_12 = arith.constant 0 : index
    %15 = vector.load %arg4[%c0_11, %c0_12] : memref<2x16xbf16, #tpu.memory_space<vmem>>, vector<2x16xbf16>
    %c0_13 = arith.constant 0 : index
    %c0_14 = arith.constant 0 : index
    %c0_15 = arith.constant 0 : index
    %16 = vector.load %arg2[%c0_13, %c0_14, %c0_15] : memref<1x1x16xbf16, #tpu.memory_space<vmem>>, vector<1x1x16xbf16>
    %17 = vector.shape_cast %16 : vector<1x1x16xbf16> to vector<1x16xbf16>
    %18 = vector.broadcast %17 : vector<1x16xbf16> to vector<2x16xbf16>
    %19 = arith.mulf %15, %18 : vector<2x16xbf16>
    %cst_16 = arith.constant dense<0.000000e+00> : vector<2x32xf32>
    %20 = tpu.matmul %19, %14, %cst_16 {dimension_numbers = #tpu.dot_dimension_numbers<[1], [0], [0], [1], [0, 0, 1, 1], [], []>} : vector<2x16xbf16>, vector<16x32xbf16>, vector<2x32xf32> -> vector<2x32xf32>
    %cst_17 = arith.constant dense<0.000000e+00> : vector<2x32xf32>
    %21 = tpu.matmul %15, %14, %cst_17 {dimension_numbers = #tpu.dot_dimension_numbers<[1], [0], [0], [1], [0, 0, 1, 1], [], []>} : vector<2x16xbf16>, vector<16x32xbf16>, vector<2x32xf32> -> vector<2x32xf32>
    %22 = arith.subf %21, %20 : vector<2x32xf32>
    %c0_18 = arith.constant 0 : index
    %c0_19 = arith.constant 0 : index
    %23 = vector.load %arg3[%c0_18, %c0_19] : memref<2x2xf32, #tpu.memory_space<vmem>>, vector<2x2xf32>
    %24 = vector.extract_strided_slice %23 {offsets = [0, 0], sizes = [2, 1], strides = [1, 1]} : vector<2x2xf32> to vector<2x1xf32>
    %25 = vector.broadcast %24 : vector<2x1xf32> to vector<2x32xf32>
    %26 = arith.mulf %20, %25 : vector<2x32xf32>
    %27 = vector.extract_strided_slice %23 {offsets = [0, 1], sizes = [2, 1], strides = [1, 1]} : vector<2x2xf32> to vector<2x1xf32>
    %28 = vector.broadcast %27 : vector<2x1xf32> to vector<2x32xf32>
    %29 = arith.mulf %22, %28 : vector<2x32xf32>
    %cst_20 = arith.constant 0.000000e+00 : f32
    %30 = vector.broadcast %cst_20 : f32 to vector<2x64xf32>
    %31 = tpu.concatenate %26, %29, %30 in 1 : vector<2x32xf32>, vector<2x32xf32>, vector<2x64xf32> -> vector<2x128xf32>
    %c0_21 = arith.constant 0 : index
    %c0_22 = arith.constant 0 : index
    %32 = vector.load %arg9[%c0_21, %c0_22] : memref<2x128xf32, #tpu.memory_space<vmem>>, vector<2x128xf32>
    tpu.vector_store %arg9[%c0_21, %c0_22], %31 {strides = array<i32>} : memref<2x128xf32, #tpu.memory_space<vmem>>, vector<2x128xf32>,
    return
  }
  func.func @transform_0(%arg0: i32) -> (i32, i32) {
    %c0_i32 = arith.constant 0 : i32
    %c0_i32_0 = arith.constant 0 : i32
    return %arg0, %c0_i32 : i32, i32
  }
  func.func @transform_1(%arg0: i32) -> (i32, i32, i32) {
    %c0_i32 = arith.constant 0 : i32
    %c0_i32_0 = arith.constant 0 : i32
    %c0_i32_1 = arith.constant 0 : i32
    return %arg0, %c0_i32, %c0_i32_0 : i32, i32, i32
  }
  func.func @transform_2(%arg0: i32) -> (i32, i32) {
    %c0_i32 = arith.constant 0 : i32
    %c0_i32_0 = arith.constant 0 : i32
    return %arg0, %c0_i32 : i32, i32
  }
  func.func @transform_3(%arg0: i32) -> (i32, i32) {
    %c0_i32 = arith.constant 0 : i32
    %c0_i32_0 = arith.constant 0 : i32
    %c0_i32_1 = arith.constant 0 : i32
    return %c0_i32, %c0_i32_0 : i32, i32
  }
  func.func @transform_4(%arg0: i32) -> (i32, i32) {
    %c0_i32 = arith.constant 0 : i32
    %c0_i32_0 = arith.constant 0 : i32
    %c0_i32_1 = arith.constant 0 : i32
    return %c0_i32, %c0_i32_0 : i32, i32
  }
  func.func @transform_5(%arg0: i32) -> (i32, i32) {
    %c0_i32 = arith.constant 0 : i32
    %c0_i32_0 = arith.constant 0 : i32
    %c0_i32_1 = arith.constant 0 : i32
    return %c0_i32, %c0_i32_0 : i32, i32
  }
  func.func @transform_6(%arg0: i32) -> (i32, i32) {
    %c0_i32 = arith.constant 0 : i32
    %c0_i32_0 = arith.constant 0 : i32
    %c0_i32_1 = arith.constant 0 : i32
    return %c0_i32, %c0_i32_0 : i32, i32
  }
  func.func @transform_7(%arg0: i32) -> (i32, i32) {
    %c0_i32 = arith.constant 0 : i32
    %c0_i32_0 = arith.constant 0 : i32
    %c0_i32_1 = arith.constant 0 : i32
    return %c0_i32, %c0_i32_0 : i32, i32
  }
  func.func @transform_8(%arg0: i32) -> (i32, i32) {
    %c0_i32 = arith.constant 0 : i32
    %c0_i32_0 = arith.constant 0 : i32
    return %arg0, %c0_i32 : i32, i32
  }
}

</mosaic_0001>

<bundles_post_ra>
// kernel: tpu_custom_call.1
= control target key start
LH: loop header
LB: loop body
LE: loop exit
PB: predicated region body
PF: predicated region fallthrough
CT: control target
= control target key end

     0   :  { %13 = vsyncpa [#allocation3], 0  ;;  %s1510_s0 = inlined_call_operand.vmem [shape: bf16[16,1024], index: 0, kind: input, shape index: {}]   ;;  %s1511_s1 = inlined_call_operand.vmem [shape: bf16[1,1,16], index: 1, kind: input, shape index: {}]   ;;  %s1512_s2 = inlined_call_operand.vmem [shape: f32[2,2], index: 2, kind: input, shape index: {}]   ;;  %s1513_s3 = inlined_call_operand.vmem [shape: bf16[2,16], index: 3, kind: input, shape index: {}]   ;;  %s1514_s4 = inlined_call_operand.hbm [shape: bf16[1024,128], index: 4, kind: input, shape index: {}]   ;;  %s1515_s5 = inlined_call_operand.vmem [shape: f32[1,128], index: 5, kind: input, shape index: {}]   ;;  %s1516_s6 = inlined_call_operand.vmem [shape: bf16[128,32], index: 6, kind: input, shape index: {}]   ;;  %s1517_s7 = inlined_call_operand.vmem [shape: f32[1,32], index: 7, kind: input, shape index: {}]   ;;  %s1518_s8 = inlined_call_operand.hbm [shape: f32[2,128], index: 8, kind: output, shape index: {}]  }
   0x1   :  { %14 = vsyncpa [#allocation4], 0  ;;  %s1371_s27 = smov [#allocation2]  }
   0x2   :  { %s28_s28 = sshll.u32 %s1371_s27, 4  ;;  %s29_s28 = int_to_ptr.vmem [resolvable:$true] %s28_s28 }
   0x3   :  { %s1335_s29 = scalar_lea.vmem %s29_s28, 8192  ;;  %p1340_p1 = scmp.lt.s32.totalorder %s29_s28, %s29_s28 }
   0x4   :  { %p1336_p0 = scmp.ne.s32.totalorder %s29_s28, %s1335_s29  ;;  %p1341_p2 = scmp.lt.s32.totalorder %s1335_s29, %s1335_s29 }
   0x6   :  { %p1342_p3 = por %p1341_p2, %p1340_p1 }
   0x8   :  { %p1343_p4 = pnand %p1342_p3, %p1336_p0 }
   0xa   :  { %1346 = shalt.err (!%p1343_p4)
}
   0xb   :  { %s1372_s30 = smov 64   ;;  %s1373_s9 = smov 4  }
   0xc   :  { %34 = dma.hbm_to_vmem [thread:$0]  %s1514_s4, 8192, %s29_s28, [#allocation3], %s1372_s30, %s1372_s30, %s1373_s9  }
   0xd   :  { %1367 = dma.done.wait [#allocation3], 8192  }
   0xe   :  { %1368 = vsyncadd [#allocation3], 4294959104  ;;  %v1255_v0 = vld [vmem:[#allocation2 + $0x78] sm:$0xff]   ;;  %v1259_v4 = vld [vmem:[#allocation2 + $0x70] sm:$0xff]   ;;  %vm1375_vm0 = vmmov 0   ;;  %vm902_vm1 = vcmask 130048  }
   0xf   :  { %v1256_v1 = vld [vmem:[#allocation2 + $0xf8] sm:$0xff]   ;;  %1110 = vmatprep.subr.bf16.mxu0 %v1255_v0  ;;  %v1260_v5 = vld [vmem:[#allocation2 + $0xf0] sm:$0xff]   ;;  %v1263_v8 = vld [vmem:[#allocation2 + $0x68] sm:$0xff]   ;;  %vm1006_vm2 = vcmask 261120   ;;  %vm1008_vm3 = vcmask 523264  }
  0x10   :  { %v1257_v2 = vld [vmem:[#allocation2 + $0x38] sm:$0xff]   ;;  %1132 = vmatprep.subr.bf16.mxu1 %v1256_v1  ;;  %v1261_v6 = vld [vmem:[#allocation2 + $0x30] sm:$0xff]   ;;  %v1264_v9 = vld [vmem:[#allocation2 + $0xe8] sm:$0xff]  }
  0x11   :  { %v1258_v3 = vld [vmem:[#allocation2 + $0xb8] sm:$0xff]   ;;  %1111 = vmatpush3.bf16.msra.mxu0 %v1257_v2  ;;  %v1262_v7 = vld [vmem:[#allocation2 + $0xb0] sm:$0xff]   ;;  %v1265_v10 = vld [vmem:[#allocation2 + $0x28] sm:$0xff]  }
  0x12   :  { %1133 = vmatpush3.bf16.msra.mxu1 %v1258_v3  ;;  %1112 = vmatprep.subr.bf16.mxu0 %v1259_v4  ;;  %v1266_v11 = vld [vmem:[#allocation2 + $0xa8] sm:$0xff]   ;;  %v1267_v12 = vld [vmem:[#allocation2 + $0x60] sm:$0xff]   ;;  %v1271_v16 = vld [vmem:[#allocation2 + $0x58] sm:$0xff]  }
  0x13   :  { %1134 = vmatprep.subr.bf16.mxu1 %v1260_v5  ;;  %v1268_v13 = vld [vmem:[#allocation2 + $0xe0] sm:$0xff]   ;;  %v1272_v17 = vld [vmem:[#allocation2 + $0xd8] sm:$0xff]   ;;  %v1275_v20 = vld [vmem:[#allocation2 + $0x50] sm:$0xff]  }
  0x14   :  { %v1269_v14 = vld [vmem:[#allocation2 + $0x20] sm:$0xff]   ;;  %v1273_v18 = vld [vmem:[#allocation2 + $0x18] sm:$0xff]   ;;  %v1276_v21 = vld [vmem:[#allocation2 + $0xd0] sm:$0xff]  }
  0x15   :  { %1113 = vmatpush3.bf16.msra.mxu0 %v1261_v6  ;;  %v1270_v15 = vld [vmem:[#allocation2 + $0xa0] sm:$0xff]   ;;  %v1274_v19 = vld [vmem:[#allocation2 + $0x98] sm:$0xff]   ;;  %v1277_v22 = vld [vmem:[#allocation2 + $0x10] sm:$0xff]  }
  0x16   :  { %1135 = vmatpush3.bf16.msra.mxu1 %v1262_v7  ;;  %1114 = vmatprep.subr.bf16.mxu0 %v1263_v8  ;;  %v1278_v23 = vld [vmem:[#allocation2 + $0x90] sm:$0xff]   ;;  %v1279_v24 = vld [vmem:[#allocation2 + $0x48] sm:$0xff]   ;;  %v1283_v28 = vld [vmem:[#allocation2 + $0x40] sm:$0xff]  }
  0x17   :  { %1136 = vmatprep.subr.bf16.mxu1 %v1264_v9  ;;  %v1280_v25 = vld [vmem:[#allocation2 + $0xc8] sm:$0xff]   ;;  %v1284_v29 = vld [vmem:[#allocation2 + $0xc0] sm:$0xff]   ;;  %v1287_v40 = vld [vmem:[#allocation2 + $0x178] sm:$0xff]  }
  0x18   :  { %v1281_v26 = vld [vmem:[#allocation2 + $0x8] sm:$0xff]   ;;  %v1285_v30 = vld [vmem:[#allocation2] sm:$0xff]   ;;  %v1288_v41 = vld [vmem:[#allocation2 + $0x1f8] sm:$0xff]  }
  0x19   :  { %1115 = vmatpush3.bf16.msra.mxu0 %v1265_v10  ;;  %v1282_v27 = vld [vmem:[#allocation2 + $0x88] sm:$0xff]   ;;  %v1286_v31 = vld [vmem:[#allocation2 + $0x80] sm:$0xff]   ;;  %v1289_v42 = vld [vmem:[#allocation2 + $0x138] sm:$0xff]  }
  0x1a   :  { %1137 = vmatpush3.bf16.msra.mxu1 %v1266_v11  ;;  %1116 = vmatprep.subr.bf16.mxu0 %v1267_v12  ;;  %v45_v32 = vld [vmem:[%s1510_s0] sm:$0xff]  ;;  %v46_v34 = vld [vmem:[%s1510_s0 + $0x8] sm:$0xff]  ;;  %v1290_v43 = vld [vmem:[#allocation2 + $0x1b8] sm:$0xff]  }
  0x1b   :  { %1138 = vmatprep.subr.bf16.mxu1 %v1268_v13  ;;  %v49_v33 = vld [vmem:[%s1510_s0 + $0x20] sm:$0xff]  ;;  %v50_v37 = vld [vmem:[%s1510_s0 + $0x28] sm:$0xff]  ;;  %v1291_v44 = vld [vmem:[#allocation2 + $0x170] sm:$0xff]  }
  0x1c   :  { %v1027_v35 = vcombine.low %v45_v32, %v49_v33  ;;  %v1028_v36 = vcombine.high %v45_v32, %v49_v33  ;;  %v1029_v38 = vcombine.low %v46_v34, %v50_v37  ;;  %v1030_v39 = vcombine.high %v46_v34, %v50_v37  ;;  %v1292_v45 = vld [vmem:[#allocation2 + $0x1f0] sm:$0xff]   ;;  %v1295_v48 = vld [vmem:[#allocation2 + $0x168] sm:$0xff]   ;;  %v1299_v52 = vld [vmem:[#allocation2 + $0x160] sm:$0xff]  }
  0x1d   :  { %1117 = vmatpush3.bf16.msra.mxu0 %v1269_v14  ;;  %v1293_v46 = vld [vmem:[#allocation2 + $0x130] sm:$0xff]   ;;  %v1296_v49 = vld [vmem:[#allocation2 + $0x1e8] sm:$0xff]   ;;  %v1300_v53 = vld [vmem:[#allocation2 + $0x1e0] sm:$0xff]  }
  0x1e   :  { %1139 = vmatpush3.bf16.msra.mxu1 %v1270_v15  ;;  %1118 = vmatprep.subr.bf16.mxu0 %v1271_v16  ;;  %v1294_v47 = vld [vmem:[#allocation2 + $0x1b0] sm:$0xff]   ;;  %v1297_v50 = vld [vmem:[#allocation2 + $0x128] sm:$0xff]   ;;  %v1301_v54 = vld [vmem:[#allocation2 + $0x120] sm:$0xff]  }
  0x1f   :  { %1140 = vmatprep.subr.bf16.mxu1 %v1272_v17  ;;  %644 = vmatprep.mubr.bf16.mxu0 %v1028_v36  ;;  %v1298_v51 = vld [vmem:[#allocation2 + $0x1a8] sm:$0xff]   ;;  %v1302_v55 = vld [vmem:[#allocation2 + $0x1a0] sm:$0xff]   ;;  %v1303_v56 = vld [vmem:[#allocation2 + $0x158] sm:$0xff]   ;;  %v1374_v17 = vmov 0.0  }
  0x20   :  { %685 = vmatprep.mubr.bf16.mxu1 %v1030_v39  ;;  %v1304_v57 = vld [vmem:[#allocation2 + $0x1d8] sm:$0xff]   ;;  %v1307_v60 = vld [vmem:[#allocation2 + $0x150] sm:$0xff]   ;;  %v1311_v0 = vld [vmem:[#allocation2 + $0x148] sm:$0xff]  }
  0x21   :  { %1119 = vmatpush3.bf16.msra.mxu0 %v1273_v18  ;;  %v1305_v58 = vld [vmem:[#allocation2 + $0x118] sm:$0xff]   ;;  %v1308_v61 = vld [vmem:[#allocation2 + $0x1d0] sm:$0xff]   ;;  %v1312_v1 = vld [vmem:[#allocation2 + $0x1c8] sm:$0xff]  }
  0x22   :  { %1141 = vmatpush3.bf16.msra.mxu1 %v1274_v19  ;;  %1120 = vmatprep.subr.bf16.mxu0 %v1275_v20  ;;  %v1306_v59 = vld [vmem:[#allocation2 + $0x198] sm:$0xff]   ;;  %v1309_v62 = vld [vmem:[#allocation2 + $0x110] sm:$0xff]   ;;  %v1313_v2 = vld [vmem:[#allocation2 + $0x108] sm:$0xff]  }
  0x23   :  { %1142 = vmatprep.subr.bf16.mxu1 %v1276_v21  ;;  %v1310_v63 = vld [vmem:[#allocation2 + $0x190] sm:$0xff]   ;;  %v1314_v3 = vld [vmem:[#allocation2 + $0x188] sm:$0xff]   ;;  %v1315_v4 = vld [vmem:[#allocation2 + $0x140] sm:$0xff]  }
  0x24   :  { %v1316_v5 = vld [vmem:[#allocation2 + $0x1c0] sm:$0xff]   ;;  %v47_v8 = vld [vmem:[%s1510_s0 + $0x10] sm:$0xff]  ;;  %v48_v12 = vld [vmem:[%s1510_s0 + $0x18] sm:$0xff] }
  0x25   :  { %1121 = vmatpush3.bf16.msra.mxu0 %v1277_v22  ;;  %v1317_v6 = vld [vmem:[#allocation2 + $0x100] sm:$0xff]   ;;  %v51_v9 = vld [vmem:[%s1510_s0 + $0x30] sm:$0xff]  ;;  %v52_v13 = vld [vmem:[%s1510_s0 + $0x38] sm:$0xff] }
  0x26   :  { %1143 = vmatpush3.bf16.msra.mxu1 %v1278_v23  ;;  %1122 = vmatprep.subr.bf16.mxu0 %v1279_v24  ;;  %v1318_v7 = vld [vmem:[#allocation2 + $0x180] sm:$0xff]   ;;  %v1031_v10 = vcombine.low %v47_v8, %v51_v9  ;;  %v1032_v11 = vcombine.high %v47_v8, %v51_v9  ;;  %v1033_v14 = vcombine.low %v48_v12, %v52_v13  ;;  %v1319_v16 = vld [vmem:[%s1516_s6 + $0x38] sm:$0xff]   ;;  %v1320_v18 = vld [vmem:[%s1516_s6 + $0x30] sm:$0xff]  }
  0x27   :  { %1144 = vmatprep.subr.bf16.mxu1 %v1280_v25  ;;  %v1034_v15 = vcombine.high %v48_v12, %v52_v13  ;;  %v1321_v19 = vld [vmem:[%s1516_s6 + $0x28] sm:$0xff]   ;;  %v1322_v20 = vld [vmem:[%s1516_s6 + $0x20] sm:$0xff]   ;;  %v1323_v21 = vld [vmem:[%s1516_s6 + $0x18] sm:$0xff]  }
  0x28   :  { %v1324_v22 = vld [vmem:[%s1516_s6 + $0x10] sm:$0xff]   ;;  %v1325_v23 = vld [vmem:[%s1516_s6 + $0x8] sm:$0xff]   ;;  %v1326_v24 = vld [vmem:[%s1516_s6] sm:$0xff]  }
  0x29   :  { %1123 = vmatpush3.bf16.msra.mxu0 %v1281_v26  ;;  %v1026_v32 = vld [vmem:[%s1515_s5] ss:$0 sm:$0xff] }
  0x2a   :  { %1145 = vmatpush3.bf16.msra.mxu1 %v1282_v27  ;;  %1124 = vmatprep.subr.bf16.mxu0 %v1283_v28  ;;  %v892_v12 = vld [vmem:[%s1513_s3] sm:$0x1]  ;;  %s1379_s3 = smov [#allocation5]  }
  0x2b   :  { %1146 = vmatprep.subr.bf16.mxu1 %v1284_v29 }
  0x2d   :  { %1125 = vmatpush3.bf16.msra.mxu0 %v1285_v30 }
  0x2e   :  { %1147 = vmatpush3.bf16.msra.mxu1 %v1286_v31  ;;  %1154 = vmatprep.subr.bf16.mxu0 %v1287_v40 }
  0x2f   :  { %1176 = vmatprep.subr.bf16.mxu1 %v1288_v41 }
  0x30   :  { %645 = vmatmul.mubr.bf16.vlgmr.msra.gmra.mxu0 %v1027_v35 }
  0x31   :  { %686 = vmatmul.mubr.bf16.vlgmr.msra.gmra.mxu1 %v1029_v38  ;;  %1155 = vmatpush3.bf16.msra.mxu0 %v1289_v42 }
  0x32   :  { %1177 = vmatpush3.bf16.msra.mxu1 %v1290_v43  ;;  %1156 = vmatprep.subr.bf16.mxu0 %v1291_v44 }
  0x33   :  { %1178 = vmatprep.subr.bf16.mxu1 %v1292_v45  ;;  %726 = vmatprep.mubr.bf16.mxu0 %v1032_v11 }
  0x34   :  { %767 = vmatprep.mubr.bf16.mxu1 %v1034_v15 }
  0x35   :  { %1157 = vmatpush3.bf16.msra.mxu0 %v1293_v46 }
  0x36   :  { %1179 = vmatpush3.bf16.msra.mxu1 %v1294_v47  ;;  %1158 = vmatprep.subr.bf16.mxu0 %v1295_v48 }
  0x37   :  { %1180 = vmatprep.subr.bf16.mxu1 %v1296_v49 }
  0x39   :  { %1159 = vmatpush3.bf16.msra.mxu0 %v1297_v50 }
  0x3a   :  { %1181 = vmatpush3.bf16.msra.mxu1 %v1298_v51  ;;  %1160 = vmatprep.subr.bf16.mxu0 %v1299_v52 }
  0x3b   :  { %1182 = vmatprep.subr.bf16.mxu1 %v1300_v53 }
  0x3d   :  { %1161 = vmatpush3.bf16.msra.mxu0 %v1301_v54 }
  0x3e   :  { %1183 = vmatpush3.bf16.msra.mxu1 %v1302_v55  ;;  %1162 = vmatprep.subr.bf16.mxu0 %v1303_v56 }
  0x3f   :  { %1184 = vmatprep.subr.bf16.mxu1 %v1304_v57 }
  0x41   :  { %1163 = vmatpush3.bf16.msra.mxu0 %v1305_v58 }
  0x42   :  { %1185 = vmatpush3.bf16.msra.mxu1 %v1306_v59  ;;  %1164 = vmatprep.subr.bf16.mxu0 %v1307_v60 }
  0x43   :  { %1186 = vmatprep.subr.bf16.mxu1 %v1308_v61  ;;  %v990_v61 = vld [vmem:[%s1512_s2] sm:$0x3] }
  0x45   :  { %1165 = vmatpush3.bf16.msra.mxu0 %v1309_v62  ;;  %v1376_v62 = vmov 1  }
  0x46   :  { %1187 = vmatpush3.bf16.msra.mxu1 %v1310_v63  ;;  %1166 = vmatprep.subr.bf16.mxu0 %v1311_v0  ;;  %v1377_v63 = vmov 0   ;;  %v897_v0 = vlaneseq }
  0x47   :  { %1188 = vmatprep.subr.bf16.mxu1 %v1312_v1  ;;  %1252 = vset.pattern.permute.xlu0 %v1376_v62 }
  0x48   :  { %998 = vperm.xlu0 %1252, %v990_v61   ;;  %v898_v1 = vshrl.u32 %v897_v0, 7 }
  0x49   :  { %1167 = vmatpush3.bf16.msra.mxu0 %v1313_v2  ;;  %v893_v2 = vld [vmem:[%s1511_s1] sm:$0x1]  ;;  %s1378_s1 = smov 32  }
  0x4a   :  { %1189 = vmatpush3.bf16.msra.mxu1 %v1314_v3  ;;  %1168 = vmatprep.subr.bf16.mxu0 %v1315_v4  ;;  %v895_v4 = vpack.i.b16 %v893_v2, %v893_v2 }
  0x4b   :  { %1190 = vmatprep.subr.bf16.mxu1 %v1316_v5  ;;  %v899_v5 = vsub.s32 0, %v898_v1 }
  0x4c   :  { %1253 = vset.pattern.permute.xlu0 %v1377_v63 }
  0x4d   :  { %1169 = vmatpush3.bf16.msra.mxu0 %v1317_v6  ;;  %993 = vperm.xlu0 %1253, %v990_v61   ;;  %v1099_v6 = vld [vmem:[%s1517_s7] ss:$0 sm:$0xff]  ;;  %v900_v9 = vrot.slane %v895_v4, %v899_v5  ;;  %s1017_s7 = sshll.u32 %s1379_s3, 4  ;;  %s1018_s7 = int_to_ptr.vmem [resolvable:$true] %s1017_s7 }
  0x4e   :  { %1191 = vmatpush3.bf16.msra.mxu1 %v1318_v7  ;;  %1211 = vmatprep.subr.bf16.mxu0 %v1374_v17  ;;  %s1347_s26 = scalar_lea.vmem %s1018_s7, 32  ;;  %p1352_p6 = scmp.lt.s32.totalorder %s1018_s7, %s1018_s7 }
  0x4f   :  { %1231 = vmatprep.subr.bf16.mxu1 %v1374_v17  ;;  %v901_v15 = vmul.bf16 %v900_v9, %v892_v12  ;;  %p1348_p5 = scmp.ne.s32.totalorder %s1018_s7, %s1347_s26  ;;  %p1353_p7 = scmp.lt.s32.totalorder %s1347_s26, %s1347_s26 }
  0x50   :  { %727 = vmatmul.mubr.bf16.vlgmr.msra.gmra.mxu0 %v1031_v10 }
  0x51   :  { %768 = vmatmul.mubr.bf16.vlgmr.msra.gmra.mxu1 %v1033_v14  ;;  %1212 = vmatpush3.bf16.msra.mxu0 %v1319_v16  ;;  %p1354_p8 = por %p1353_p7, %p1352_p6 }
  0x52   :  { %1213 = vmatprep.subr.bf16.mxu0 %v1374_v17  ;;  %1227 = vmatprep.mubr.msk.bf16.mxu0 %vm1375_vm0, %v1374_v17 }
  0x53   :  { %1233 = vmatprep.mubr.msk.bf16.mxu1 %vm1375_vm0, %v1374_v17  ;;  %1254 = vset.pattern.permute.xlu0 %v1376_v62  ;;  %p1355_p9 = pnand %p1354_p8, %p1348_p5 }
  0x55   :  { %1214 = vmatpush3.bf16.msra.mxu0 %v1320_v18 }
  0x56   :  { %1215 = vmatprep.subr.bf16.mxu0 %v1374_v17 }
  0x59   :  { %1216 = vmatpush3.bf16.msra.mxu0 %v1321_v19 }
  0x5a   :  { %1217 = vmatprep.subr.bf16.mxu0 %v1374_v17 }
  0x5d   :  { %1218 = vmatpush3.bf16.msra.mxu0 %v1322_v20 }
  0x5e   :  { %1219 = vmatprep.subr.bf16.mxu0 %v1374_v17 }
  0x61   :  { %1220 = vmatpush3.bf16.msra.mxu0 %v1323_v21 }
  0x62   :  { %1221 = vmatprep.subr.bf16.mxu0 %v1374_v17 }
  0x65   :  { %1222 = vmatpush3.bf16.msra.mxu0 %v1324_v22 }
  0x66   :  { %1223 = vmatprep.subr.bf16.mxu0 %v1374_v17 }
  0x69   :  { %1224 = vmatpush3.bf16.msra.mxu0 %v1325_v23 }
  0x6a   :  { %1225 = vmatprep.subr.bf16.mxu0 %v1374_v17 }
  0x6d   :  { %1226 = vmatpush3.bf16.msra.mxu0 %v1326_v24 }
  0xc3   :  { %v999_v23 = vpop.permute.xlu0 %998 }
  0xf0   :  { %v1126_v25 = vpop.f32.mrf.mxu0 }
  0xf1   :  { %v1148_v26 = vpop.f32.mrf.mxu1 }
  0xf2   :  { %v1127_v27 = vpop.f32.mrf.mxu0 }
  0xf3   :  { %v1149_v28 = vpop.f32.mrf.mxu1  ;;  %v1128_v30 = vadd.f32 %v1127_v27, %v1126_v25 }
  0xf4   :  { %v1129_v29 = vpop.f32.mrf.mxu0  ;;  %v1150_v35 = vadd.f32 %v1149_v28, %v1148_v26  ;;  %v994_v28 = vpop.permute.xlu0 %993 }
  0xf5   :  { %v1151_v31 = vpop.f32.mrf.mxu1  ;;  %v647_v34 = vadd.f32 %v1128_v30, %v1026_v32 }
  0xf6   :  { %v1130_v33 = vpop.f32.mrf.mxu0 }
  0xf7   :  { %v1131_v36 = vadd.f32 %v1130_v33, %v1129_v29  ;;  %v1152_v37 = vpop.f32.mrf.mxu1  ;;  %v688_v41 = vadd.f32 %v1150_v35, %v647_v34 }
  0xf8   :  { %v1153_v46 = vadd.f32 %v1152_v37, %v1151_v31 }
  0xf9   :  { %v650_v42 = vadd.f32 %v1131_v36, %v1026_v32 }
  0xfb   :  { %v691_v50 = vadd.f32 %v1153_v46, %v650_v42 }
 0x110   :  { %v1170_v38 = vpop.f32.mrf.mxu0 }
 0x111   :  { %v1192_v39 = vpop.f32.mrf.mxu1 }
 0x112   :  { %v1171_v40 = vpop.f32.mrf.mxu0 }
 0x113   :  { %v1172_v43 = vadd.f32 %v1171_v40, %v1170_v38  ;;  %v1193_v44 = vpop.f32.mrf.mxu1 }
 0x114   :  { %v1173_v45 = vpop.f32.mrf.mxu0  ;;  %v1194_v51 = vadd.f32 %v1193_v44, %v1192_v39 }
 0x115   :  { %v729_v47 = vadd.f32 %v1172_v43, %v688_v41  ;;  %v1195_v48 = vpop.f32.mrf.mxu1 }
 0x116   :  { %v1174_v49 = vpop.f32.mrf.mxu0 }
 0x117   :  { %v1175_v52 = vadd.f32 %v1174_v49, %v1173_v45  ;;  %v1196_v53 = vpop.f32.mrf.mxu1  ;;  %v770_v54 = vadd.f32 %v1194_v51, %v729_v47 }
 0x118   :  { %v1197_v56 = vadd.f32 %v1196_v53, %v1195_v48 }
 0x119   :  { %v732_v55 = vadd.f32 %v1175_v52, %v691_v50  ;;  %v776_v58 = vmax.f32 %v770_v54, 0.0 }
 0x11b   :  { %v773_v57 = vadd.f32 %v1197_v56, %v732_v55 }
 0x11d   :  { %v777_v59 = vmax.f32 %v773_v57, 0.0 }
 0x11f   :  { %v778_v60 = vpack.c.bf16 %v777_v59, %v776_v58 }
 0x121   :  { %1228 = vmatmul.mubr.bf16.vlgmr.msra.gmra.mxu0 %v778_v60 }
 0x1e1   :  { %v884_v3 = vpop.f32.mrf.mxu0 }
 0x1e2   :  { %v885_v10 = vadd.f32 %v1099_v6, %v884_v3 }
 0x1e3   :  { %v1229_v7 = vpop.f32.mrf.mxu0 }
 0x1e5   :  { %v887_v8 = vpop.f32.mrf.mxu0 }
 0x1e6   :  { %v888_v11 = vadd.f32 %v1099_v6, %v887_v8 }
 0x1e7   :  { %v1230_v13 = vpop.f32.mrf.mxu0 }
 0x1e8   :  { %v891_v14 = vpack.c.bf16 %v888_v11, %v885_v10 }
 0x1ea   :  { %1232 = vmatpush3.bf16.msra.mxu1 %v891_v14 }
 0x1eb   :  { %1237 = vmatprep.subr.bf16.mxu1 %v1374_v17 }
 0x1ed   :  { %1234 = vmatmul.mubr.msk.bf16.vlgmr.msra.gmra.mxu1 %vm902_vm1, %v901_v15 }
 0x1ee   :  { %1238 = vmatpush3.bf16.msra.mxu1 %v891_v14  ;;  %1239 = vmatprep.mubr.msk.bf16.mxu1 %vm1375_vm0, %v1374_v17 }
 0x1f5   :  { %1240 = vmatmul.mubr.msk.bf16.vlgmr.msra.gmra.mxu1 %vm902_vm1, %v892_v12 }
 0x2ad   :  { %v940_v16 = vpop.f32.mrf.mxu1 }
 0x2ae   :  { %v996_v29 = vmul.f32 %v994_v28, %v940_v16 }
 0x2af   :  { %v1235_v18 = vpop.f32.mrf.mxu1 }
 0x2b1   :  { %v943_v19 = vpop.f32.mrf.mxu1 }
 0x2b3   :  { %v1236_v20 = vpop.f32.mrf.mxu1 }
 0x2b5   :  { %v983_v21 = vpop.f32.mrf.mxu1 }
 0x2b6   :  { %v989_v22 = vsub.f32 %v983_v21, %v940_v16 }
 0x2b7   :  { %v1241_v24 = vpop.f32.mrf.mxu1 }
 0x2b8   :  { %v1001_v25 = vmul.f32 %v999_v23, %v989_v22 }
 0x2b9   :  { %v986_v26 = vpop.f32.mrf.mxu1 }
 0x2ba   :  { %1003 = vrot.lane.b32.xlu1 %v1001_v25, %s1378_s1 }
 0x2bb   :  { %v1242_v27 = vpop.f32.mrf.mxu1 }
 0x32c   :  { %v1004_v17 = vpop.permute.xlu1 %1003 }
 0x32d   :  { %v1007_v30 = vsel %vm1006_vm2, %v996_v29, %v1004_v17 }
 0x32e   :  { %v1009_v31 = vsel %vm1008_vm3, %v1007_v30, 0.0 }
 0x32f   :  { %1010 = vst [vmem:[#allocation5] sm:$0x3] %v1009_v31 }
 0x330   :  { %1358 = shalt.err (!%p1355_p9)
}
 0x331   :  { %1020 = dma.vmem_to_hbm [thread:$0]  %s1018_s7, 32, %s1518_s8, [#allocation4]  }
 0x332   :  { %1369 = dma.done.wait [#allocation4], 32  }
 0x333   :  { %1370 = vsyncadd [#allocation4], 4294967264 }
 0x334   :  { %1024 = vsyncpa [#allocation3], 1 }
 0x335   :  { %1025 = vsyncpa [#allocation4], 1 }

</bundles_post_ra>
